<compile_context>
chip_gen: v5e
topology: v5e:2x2
jax: 0.10.0
libtpu: 0.0.40
codegen_flags: <defaults>
</compile_context>

<pallas_src>
import jax
import jax.numpy as jnp
from jax.experimental import pallas as pl
from jax.experimental.pallas import tpu as pltpu


def _round_up(x, m):
    return ((x + m - 1) // m) * m


def _largest_divisor_tile(dim, target, align):
    """Largest divisor of `dim` that is <= target and a multiple of `align`;
    falls back to the full dim (always a legal full-extent block)."""
    if dim <= target:
        return dim
    for t in range(target, 0, -1):
        if dim % t == 0 and t % align == 0:
            return t
    return dim


def _patch_embed_resident_kernel(p_ref, w_ref, posb_ref, o_ref):
    # p_ref: (tn, K)  patch rows for this row tile
    # w_ref: (K, D)   full flattened conv weight -- VMEM-resident across the grid
    # posb_ref: (tn, D) f32 pos-embedding + bias
    # o_ref: (tn, D)  output tokens
    o_ref[...] = (posb_ref[...] +
                  jnp.dot(p_ref[...], w_ref[...],
                          preferred_element_type=jnp.float32)).astype(o_ref.dtype)


def _patch_embed_ktiled_kernel(p_ref, w_ref, posb_ref, o_ref, acc_ref):
    # Fallback when the full (K, D) weight does not fit VMEM: output-stationary
    # f32 accumulator over K tiles, initialized with pos+bias (no zero-fill).
    k = pl.program_id(1)

    @pl.when(k == 0)
    def _init():
        acc_ref[...] = posb_ref[...]

    acc_ref[...] += jnp.dot(p_ref[...], w_ref[...],
                            preferred_element_type=jnp.float32)

    @pl.when(k == pl.num_programs(1) - 1)
    def _finalize():
        o_ref[...] = acc_ref[...].astype(o_ref.dtype)


def patched_input_adapter_forward(x, conv_w, conv_b, pos_spatial, pos_temporal,
                                  temporal_patch_size, spatial_patch_size,
                                  compute_dtype=jnp.bfloat16, out_dtype=None):
    """Pallas implementation of PatchedInputAdapter.forward.

    x:            (B, C, T, H, W)
    conv_w:       (D, C, pt, ps, ps)
    conv_b:       (D,)
    pos_spatial:  (1, S, D)   S = (H//ps)*(W//ps)
    pos_temporal: (1, Tg, D)  Tg = T//pt
    compute_dtype: dtype for patches/weights on the MXU (default bf16 -- recommended on
                   all generations, v5e included); pass None to keep x.dtype (f32).
    out_dtype:    output dtype (default x.dtype). Accumulation is always f32.
    returns:      (B, N, D)   N = Tg * S   (token order 'b (t s) d', temporal-major)
    """
    B, C, T, H, W = x.shape
    pt, ps = temporal_patch_size, spatial_patch_size
    D = conv_w.shape[0]
    Tg, Hg, Wg = T // pt, H // ps, W // ps
    S = Hg * Wg
    N = Tg * S
    K = C * pt * ps * ps

    if out_dtype is None:
        out_dtype = x.dtype
    cdt = x.dtype if compute_dtype is None else jnp.dtype(compute_dtype)
    in_it = jnp.dtype(cdt).itemsize
    out_it = jnp.dtype(out_dtype).itemsize

    # --- glue: cast FIRST so the materialized patch array is written/read at compute
    # width, then extract non-overlapping 3D patches, K ordered (c, kt, kh, kw).
    # TODO(synk): fusing this 8-D reshape/transpose into the kernel would save one HBM
    # round trip of x, but needs an in-kernel 6-D transpose that Mosaic handles poorly.
    xc = x.astype(cdt)
    xp = xc.reshape(B, C, Tg, pt, Hg, ps, Wg, ps)
    xp = xp.transpose(0, 2, 4, 6, 1, 3, 5, 7)          # (B, Tg, Hg, Wg, C, pt, ps, ps)
    patches = xp.reshape(B, N, K)

    # --- glue: (D, C, pt, ps, ps) -> (K, D); pos embedding with bias folded in (f32)
    w_flat = conv_w.reshape(D, K).T.astype(cdt)
    posb = (jnp.tile(pos_spatial[0], (Tg, 1))
            + jnp.repeat(pos_temporal[0], S, axis=0)
            + conv_b[None, :]).astype(jnp.float32)      # (N, D)

    # --- generation-aware VMEM budget --------------------------------------------
    try:
        vmem_cap = int(getattr(pltpu.get_tpu_info(), "vmem_capacity_bytes", 64 << 20))
    except Exception:
        vmem_cap = 64 << 20                              # conservative (v7x-sized)
    vmem_limit_cap = min((vmem_cap * 3) // 4, 100 << 20)  # ~96 MiB (v5e/v6e), ~48 MiB (v7x)
    budget = vmem_limit_cap - (8 << 20)                   # headroom for Mosaic scratch

    # --- tile sizing ---------------------------------------------------------------
    row_align = 16 if in_it == 2 else (32 if in_it == 1 else 8)
    tn_target = 512 if vmem_cap > (64 << 20) else 256
    tn = min(tn_target, _round_up(N, row_align))
    tn = max(row_align, _round_up(tn, row_align))

    def _resident_bytes(tn_):
        return (2 * K * D * in_it            # weight (held; double-buffer allocation)
                + 2 * tn_ * K * in_it        # patch tile (double-buffered)
                + 2 * tn_ * D * 4            # posb tile (f32)
                + 2 * tn_ * D * out_it)      # output tile

    def _ktiled_bytes(tn_, tk_):
        return (2 * tk_ * D * in_it + 2 * tn_ * tk_ * in_it
                + 2 * tn_ * D * 4 + 2 * tn_ * D * out_it
                + tn_ * D * 4)               # f32 accumulator scratch

    weight_resident = (2 * K * D * in_it) <= (budget // 2)
    if weight_resident:
        tk = K
        while tn > row_align and _resident_bytes(tn) > budget:
            tn = max(row_align, _round_up(tn // 2, row_align))
    else:
        tk = _largest_divisor_tile(K, 1024, 128)
        while tn > row_align and _ktiled_bytes(tn, tk) > budget:
            tn = max(row_align, _round_up(tn // 2, row_align))

    # Guarantee >= 2 row tiles when possible so v7x's two TensorCores both get work.
    if B == 1 and tn >= N and N > row_align:
        tn = _round_up(-(-N // 2), row_align)

    N_pad = _round_up(N, tn)
    tiles_per_batch = N_pad // tn
    total_tiles = B * tiles_per_batch

    if N_pad != N:
        patches = jnp.pad(patches, ((0, 0), (0, N_pad - N), (0, 0)))
        posb = jnp.pad(posb, ((0, N_pad - N), (0, 0)))

    # Collapse batch into the row axis: one long (B*N_pad, K) GEMM.
    patches2d = patches.reshape(B * N_pad, K)

    vmem_bytes = _resident_bytes(tn) if weight_resident else _ktiled_bytes(tn, tk)
    vmem_limit = int(min(max(vmem_bytes + (8 << 20), 32 << 20), vmem_limit_cap))

    if weight_resident:
        grid_spec = pltpu.PrefetchScalarGridSpec(
            num_scalar_prefetch=0,
            grid=(total_tiles,),
            in_specs=[
                pl.BlockSpec((tn, K), lambda n: (n, 0)),                    # patches
                pl.BlockSpec((K, D), lambda n: (0, 0)),                     # weight (resident)
                pl.BlockSpec((tn, D), lambda n: (n % tiles_per_batch, 0)),  # pos + bias
            ],
            out_specs=pl.BlockSpec((tn, D), lambda n: (n, 0)),
        )
        kernel = _patch_embed_resident_kernel
        dim_sem = ("parallel",)
    else:
        k_tiles = K // tk
        grid_spec = pltpu.PrefetchScalarGridSpec(
            num_scalar_prefetch=0,
            grid=(total_tiles, k_tiles),
            in_specs=[
                pl.BlockSpec((tn, tk), lambda n, k: (n, k)),
                pl.BlockSpec((tk, D), lambda n, k: (k, 0)),
                pl.BlockSpec((tn, D), lambda n, k: (n % tiles_per_batch, 0)),
            ],
            out_specs=pl.BlockSpec((tn, D), lambda n, k: (n, 0)),
            scratch_shapes=[pltpu.VMEM((tn, D), jnp.float32)],
        )
        kernel = _patch_embed_ktiled_kernel
        dim_sem = ("parallel", "arbitrary")

    out = pl.pallas_call(
        kernel,
        out_shape=jax.ShapeDtypeStruct((B * N_pad, D), out_dtype),
        grid_spec=grid_spec,
        compiler_params=pltpu.CompilerParams(
            dimension_semantics=dim_sem,
            vmem_limit_bytes=vmem_limit),
    )(patches2d, w_flat, posb)

    return out.reshape(B, N_pad, D)[:, :N, :]


if __name__ == "__main__":
    # Small shapes consistent with the module:
    #   num_channels=4, spatial_patch_size=8, temporal_patch_size=4,
    #   image_size=16, num_frames=8, embd_dim=32
    B, C, T, H, W = 2, 4, 8, 16, 16
    pt, ps = 4, 8
    D = 32
    Tg, Hg, Wg = T // pt, H // ps, W // ps
    S = Hg * Wg
    N = Tg * S

    key = jax.random.PRNGKey(0)
    kx, kw, kb, kps, kpt = jax.random.split(key, 5)

    x = jax.random.normal(kx, (B, C, T, H, W), dtype=jnp.float32)
    conv_w = jax.random.normal(kw, (D, C, pt, ps, ps), dtype=jnp.float32) * 0.02
    conv_b = jax.random.normal(kb, (D,), dtype=jnp.float32) * 0.02
    pos_spatial = jax.random.normal(kps, (1, S, D), dtype=jnp.float32) * 0.02
    pos_temporal = jax.random.normal(kpt, (1, Tg, D), dtype=jnp.float32) * 0.02

    # Pure-JAX reference (strided conv == dot on extracted patches)
    xp_ref = x.reshape(B, C, Tg, pt, Hg, ps, Wg, ps).transpose(0, 2, 4, 6, 1, 3, 5, 7)
    patches_ref = xp_ref.reshape(B, N, C * pt * ps * ps)
    ref = patches_ref @ conv_w.reshape(D, -1).T + conv_b[None, None, :]
    pos_ref = jnp.tile(pos_spatial[0], (Tg, 1)) + jnp.repeat(pos_temporal[0], S, axis=0)
    ref = ref + pos_ref[None]

    # f32 end-to-end path
    out_f32 = patched_input_adapter_forward(
        x, conv_w, conv_b, pos_spatial, pos_temporal,
        temporal_patch_size=pt, spatial_patch_size=ps, compute_dtype=None)
    out_f32 = jax.block_until_ready(out_f32)
    assert out_f32.shape == (B, N, D)
    assert jnp.allclose(out_f32, ref, atol=1e-4, rtol=1e-4)

    # Default path: bf16 MXU inputs (recommended on v5e/v6e/v7x), f32 accumulate/output.
    out_bf16 = patched_input_adapter_forward(
        x, conv_w, conv_b, pos_spatial, pos_temporal,
        temporal_patch_size=pt, spatial_patch_size=ps)
    out_bf16 = jax.block_until_ready(out_bf16)
    assert out_bf16.shape == (B, N, D)
    assert jnp.allclose(out_bf16, ref, atol=5e-2, rtol=5e-2)

    print("KERNEL_OK")
</pallas_src>

<mosaic_0001>
module attributes {stable_mosaic.version = 11 : i64} {
  func.func @_patch_embed_resident_kernel(%arg0: i32, %arg1: memref<8x1024xf32, #tpu.memory_space<vmem>>, %arg2: memref<1024x32xf32, #tpu.memory_space<vmem>>, %arg3: memref<8x32xf32, #tpu.memory_space<vmem>>, %arg4: memref<8x32xf32, #tpu.memory_space<vmem>>) attributes {dimension_semantics = [#tpu.dimension_semantics<parallel>], iteration_bounds = array<i64: 2>, scalar_prefetch = 0 : i64, scratch_operands = 0 : i64, tpu.core_type = #tpu.core_type<tc>, window_params = [{transform_indices = @transform_0, window_bounds = array<i64: 8, 1024>}, {pipeline_mode = #tpu.pipeline_mode<synchronous>, transform_indices = @transform_1, window_bounds = array<i64: 1024, 32>}, {transform_indices = @transform_2, window_bounds = array<i64: 8, 32>}, {transform_indices = @transform_3, window_bounds = array<i64: 8, 32>}]} {
    %c0 = arith.constant 0 : index
    %c0_0 = arith.constant 0 : index
    %0 = vector.load %arg3[%c0, %c0_0] : memref<8x32xf32, #tpu.memory_space<vmem>>, vector<8x32xf32>
    %c0_1 = arith.constant 0 : index
    %c0_2 = arith.constant 0 : index
    %1 = vector.load %arg1[%c0_1, %c0_2] : memref<8x1024xf32, #tpu.memory_space<vmem>>, vector<8x1024xf32>
    %c0_3 = arith.constant 0 : index
    %c0_4 = arith.constant 0 : index
    %2 = vector.load %arg2[%c0_3, %c0_4] : memref<1024x32xf32, #tpu.memory_space<vmem>>, vector<1024x32xf32>
    %cst = arith.constant dense<0.000000e+00> : vector<8x32xf32>
    %3 = tpu.matmul %1, %2, %cst {dimension_numbers = #tpu.dot_dimension_numbers<[1], [0], [0], [1], [0, 0, 1, 1], [], []>} : vector<8x1024xf32>, vector<1024x32xf32>, vector<8x32xf32> -> vector<8x32xf32>
    %4 = arith.addf %0, %3 : vector<8x32xf32>
    %c0_5 = arith.constant 0 : index
    %c0_6 = arith.constant 0 : index
    %5 = vector.load %arg4[%c0_5, %c0_6] : memref<8x32xf32, #tpu.memory_space<vmem>>, vector<8x32xf32>
    tpu.vector_store %arg4[%c0_5, %c0_6], %4 {strides = array<i32>} : memref<8x32xf32, #tpu.memory_space<vmem>>, vector<8x32xf32>,
    return
  }
  func.func @transform_0(%arg0: i32) -> (i32, i32) {
    %c0_i32 = arith.constant 0 : i32
    %c0_i32_0 = arith.constant 0 : i32
    return %arg0, %c0_i32 : i32, i32
  }
  func.func @transform_1(%arg0: i32) -> (i32, i32) {
    %c0_i32 = arith.constant 0 : i32
    %c0_i32_0 = arith.constant 0 : i32
    %c0_i32_1 = arith.constant 0 : i32
    return %c0_i32, %c0_i32_0 : i32, i32
  }
  func.func @transform_2(%arg0: i32) -> (i32, i32) {
    %c1_i32 = arith.constant 1 : i32
    %c0_i32 = arith.constant 0 : i32
    %0 = arith.cmpi eq, %c1_i32, %c0_i32 : i32
    %c1_i32_0 = arith.constant 1 : i32
    %1 = arith.select %0, %c1_i32_0, %c1_i32 : i32
    %2 = arith.remsi %arg0, %1 : i32
    %c0_i32_1 = arith.constant 0 : i32
    %3 = arith.cmpi ne, %2, %c0_i32_1 : i32
    %c0_i32_2 = arith.constant 0 : i32
    %4 = arith.cmpi slt, %2, %c0_i32_2 : i32
    %c0_i32_3 = arith.constant 0 : i32
    %5 = arith.cmpi slt, %1, %c0_i32_3 : i32
    %6 = arith.xori %4, %5 : i1
    %7 = arith.andi %6, %3 : i1
    %8 = arith.addi %2, %1 : i32
    %9 = arith.select %7, %8, %2 : i32
    %c0_i32_4 = arith.constant 0 : i32
    %c0_i32_5 = arith.constant 0 : i32
    return %9, %c0_i32_4 : i32, i32
  }
  func.func @transform_3(%arg0: i32) -> (i32, i32) {
    %c0_i32 = arith.constant 0 : i32
    %c0_i32_0 = arith.constant 0 : i32
    return %arg0, %c0_i32 : i32, i32
  }
}

</mosaic_0001>

<bundles_post_ra>
// kernel: tpu_custom_call.1
= control target key start
LH: loop header
LB: loop body
LE: loop exit
PB: predicated region body
PF: predicated region fallthrough
CT: control target
= control target key end

     0   :  { %8 = vsyncpa [#allocation3], 0  ;;  %s1166_s0 = inlined_call_operand.vmem [shape: f32[16,1024], index: 0, kind: input, shape index: {}]   ;;  %s1167_s1 = inlined_call_operand.vmem [shape: f32[1024,32], index: 1, kind: input, shape index: {}]   ;;  %s1168_s2 = inlined_call_operand.vmem [shape: f32[8,32], index: 2, kind: input, shape index: {}]   ;;  %s1169_s3 = inlined_call_operand.hbm [shape: f32[16,32], index: 3, kind: output, shape index: {}]  }
   0x1   :  { %10 = vsyncpa [#allocation3 + $0x1], 0  ;;  %s679_s12 = smov 0   ;;  %s681_s13 = smov 0  }
   0x2   :  { %s683_s14 = smov 0   ;;  %s685_s15 = smov 0  }
   0x3 LB: > { %s700_s16 = sadd.s32 4294967295, %s657_s15   ;;  %s544_s17 = sadd.s32 4294967294, %s657_s15   ;;  %s657_s15 = sphi %s685_s15, %s1175_s15   ;;  %s653_s14 = sphi %s683_s14, %s1174_s14   ;;  %s649_s13 = sphi %s681_s13, %s1173_s13   ;;  %s645_s12 = sphi %s679_s12, %s1172_s12  }
   0x4   : > { %s704_s18 = sadd.s32 1, %s657_s15   ;;  %s91_s19 = sadd.s32 1, %s653_s14 }
   0x5   : > { %s88_s20 = ssub.s32 %s657_s15, %s704_s18  ;;  %p101_p0 = scmp.ne.s32.totalorder %s653_s14, %s649_s13 }
   0x6   : > { %p89_p1 = scmp.eq.s32.totalorder %s88_s20, 0  ;;  %p102_p2 = scmp.eq.s32.totalorder %s700_s16, 1 }
   0x7   : > { %p107_p3 = scmp.ne.s32.totalorder %s649_s13, %s645_s12  ;;  %p108_p4 = scmp.eq.s32.totalorder %s544_s17, 1 }
   0x8   : > { %s715_s21 = scalar_select %p89_p1, %s653_s14, %s91_s19  }
   0x9   : > { %p717_p5 = por %p102_p2, %p101_p0  ;;  %p721_p6 = por %p108_p4, %p107_p3 }
   0xa   : > { %p547_p7 = scmp.ge.s32.totalorder %s657_s15, 1  ;;  %p140_p8 = scmp.lt.s32.totalorder %s657_s15, 3 }
   0xc   : > { %p141_p9 = pnand %p547_p7, %p140_p8 }
   0xd   : > { %p164_p10 = scmp.lt.s32.totalorder (!%p141_p9), %s700_s16, 1  ;;  %s161_s9 = sand.u32 (!%p141_p9), 1, %s649_s13  }
   0xe   : > { %144 = sbr.rel (%p141_p9) target bundleno = 227 (0xe3), region = 32  ;;  %s548_s17 = sshll.u32 (!%p141_p9), %s161_s9, 3 }
   0xf   : > { %s163_s26 = scalar_lea.vmem (!%p141_p9), [#allocation2], %s548_s17  ;;  %s615_s5 = scalar_lea.hbm (!%p141_p9), %s1169_s3, 16 }
  0x10   : > { %s482_s27 = sshll.u32 (!%p141_p9), %s163_s26, 4  ;;  %s483_s27 = int_to_ptr.vmem [resolvable:$true] %s482_s27 }
  0x13   : > { %v193_v0 = vld [vmem:[%s1167_s1 + $0x78] sm:$0xff]  ;;  %v192_v2 = vld [vmem:[%s1167_s1 + $0x70] sm:$0xff]  ;;  %v191_v6 = vld [vmem:[%s1167_s1 + $0x68] sm:$0xff]  ;;  %s995_s11 = scalar_select %p164_p10, %s700_s16, 1  ;;  %vm467_vm0 = vcmask 261120  }
  0x14   : > { %v225_v1 = vld [vmem:[%s1167_s1 + $0x178] sm:$0xff]  ;;  %306 = vmatpush.msra.mxu0 %v193_v0  ;;  %v224_v4 = vld [vmem:[%s1167_s1 + $0x170] sm:$0xff]  ;;  %v223_v8 = vld [vmem:[%s1167_s1 + $0x168] sm:$0xff] }
  0x15   : > { %346 = vmatpush.msra.mxu2 %v225_v1  ;;  %v209_v3 = vld [vmem:[%s1167_s1 + $0xf8] sm:$0xff]  ;;  %v208_v7 = vld [vmem:[%s1167_s1 + $0xf0] sm:$0xff]  ;;  %v207_v10 = vld [vmem:[%s1167_s1 + $0xe8] sm:$0xff]  ;;  %s555_s10 = sshll.u32 %s995_s11, 6 }
  0x16   : > { %v241_v5 = vld [vmem:[%s1167_s1 + $0x1f8] sm:$0xff]  ;;  %326 = vmatpush.msra.mxu1 %v209_v3  ;;  %307 = vmatpush.msra.mxu0 %v192_v2  ;;  %v240_v9 = vld [vmem:[%s1167_s1 + $0x1f0] sm:$0xff]  ;;  %v190_v11 = vld [vmem:[%s1167_s1 + $0x60] sm:$0xff]  ;;  %s1043_s7 = scalar_lea.vmem %s1166_s0, %s555_s10 }
  0x17   : > { %366 = vmatpush.msra.mxu3 %v241_v5  ;;  %347 = vmatpush.msra.mxu2 %v224_v4  ;;  %v222_v12 = vld [vmem:[%s1167_s1 + $0x160] sm:$0xff]  ;;  %v239_v13 = vld [vmem:[%s1167_s1 + $0x1e8] sm:$0xff]  ;;  %v189_v16 = vld [vmem:[%s1167_s1 + $0x58] sm:$0xff] }
  0x18   : > { %327 = vmatpush.msra.mxu1 %v208_v7  ;;  %308 = vmatpush.msra.mxu0 %v191_v6  ;;  %v206_v14 = vld [vmem:[%s1167_s1 + $0xe0] sm:$0xff]  ;;  %v221_v17 = vld [vmem:[%s1167_s1 + $0x158] sm:$0xff]  ;;  %v188_v20 = vld [vmem:[%s1167_s1 + $0x50] sm:$0xff] }
  0x19   : > { %367 = vmatpush.msra.mxu3 %v240_v9  ;;  %348 = vmatpush.msra.mxu2 %v223_v8  ;;  %v238_v15 = vld [vmem:[%s1167_s1 + $0x1e0] sm:$0xff]  ;;  %v205_v18 = vld [vmem:[%s1167_s1 + $0xd8] sm:$0xff]  ;;  %v220_v21 = vld [vmem:[%s1167_s1 + $0x150] sm:$0xff] }
  0x1a   : > { %328 = vmatpush.msra.mxu1 %v207_v10  ;;  %309 = vmatpush.msra.mxu0 %v190_v11  ;;  %v237_v19 = vld [vmem:[%s1167_s1 + $0x1d8] sm:$0xff]  ;;  %v204_v22 = vld [vmem:[%s1167_s1 + $0xd0] sm:$0xff]  ;;  %v187_v24 = vld [vmem:[%s1167_s1 + $0x48] sm:$0xff] }
  0x1b   : > { %368 = vmatpush.msra.mxu3 %v239_v13  ;;  %349 = vmatpush.msra.mxu2 %v222_v12  ;;  %v236_v23 = vld [vmem:[%s1167_s1 + $0x1d0] sm:$0xff]  ;;  %v219_v25 = vld [vmem:[%s1167_s1 + $0x148] sm:$0xff]  ;;  %v186_v28 = vld [vmem:[%s1167_s1 + $0x40] sm:$0xff] }
  0x1c   : > { %329 = vmatpush.msra.mxu1 %v206_v14  ;;  %310 = vmatpush.msra.mxu0 %v189_v16  ;;  %v203_v26 = vld [vmem:[%s1167_s1 + $0xc8] sm:$0xff]  ;;  %v218_v29 = vld [vmem:[%s1167_s1 + $0x140] sm:$0xff]  ;;  %v185_v32 = vld [vmem:[%s1167_s1 + $0x38] sm:$0xff] }
  0x1d   : > { %369 = vmatpush.msra.mxu3 %v238_v15  ;;  %350 = vmatpush.msra.mxu2 %v221_v17  ;;  %v235_v27 = vld [vmem:[%s1167_s1 + $0x1c8] sm:$0xff]  ;;  %v202_v30 = vld [vmem:[%s1167_s1 + $0xc0] sm:$0xff]  ;;  %v217_v33 = vld [vmem:[%s1167_s1 + $0x138] sm:$0xff] }
  0x1e   : > { %330 = vmatpush.msra.mxu1 %v205_v18  ;;  %311 = vmatpush.msra.mxu0 %v188_v20  ;;  %v234_v31 = vld [vmem:[%s1167_s1 + $0x1c0] sm:$0xff]  ;;  %v201_v34 = vld [vmem:[%s1167_s1 + $0xb8] sm:$0xff]  ;;  %v184_v36 = vld [vmem:[%s1167_s1 + $0x30] sm:$0xff] }
  0x1f   : > { %370 = vmatpush.msra.mxu3 %v237_v19  ;;  %351 = vmatpush.msra.mxu2 %v220_v21  ;;  %v233_v35 = vld [vmem:[%s1167_s1 + $0x1b8] sm:$0xff]  ;;  %v216_v37 = vld [vmem:[%s1167_s1 + $0x130] sm:$0xff]  ;;  %v183_v40 = vld [vmem:[%s1167_s1 + $0x28] sm:$0xff] }
  0x20   : > { %331 = vmatpush.msra.mxu1 %v204_v22  ;;  %312 = vmatpush.msra.mxu0 %v187_v24  ;;  %v200_v38 = vld [vmem:[%s1167_s1 + $0xb0] sm:$0xff]  ;;  %v215_v41 = vld [vmem:[%s1167_s1 + $0x128] sm:$0xff]  ;;  %v182_v44 = vld [vmem:[%s1167_s1 + $0x20] sm:$0xff] }
  0x21   : > { %371 = vmatpush.msra.mxu3 %v236_v23  ;;  %352 = vmatpush.msra.mxu2 %v219_v25  ;;  %v232_v39 = vld [vmem:[%s1167_s1 + $0x1b0] sm:$0xff]  ;;  %v199_v42 = vld [vmem:[%s1167_s1 + $0xa8] sm:$0xff]  ;;  %v214_v45 = vld [vmem:[%s1167_s1 + $0x120] sm:$0xff] }
  0x22   : > { %332 = vmatpush.msra.mxu1 %v203_v26  ;;  %313 = vmatpush.msra.mxu0 %v186_v28  ;;  %v231_v43 = vld [vmem:[%s1167_s1 + $0x1a8] sm:$0xff]  ;;  %v198_v46 = vld [vmem:[%s1167_s1 + $0xa0] sm:$0xff]  ;;  %v181_v48 = vld [vmem:[%s1167_s1 + $0x18] sm:$0xff] }
  0x23   : > { %372 = vmatpush.msra.mxu3 %v235_v27  ;;  %353 = vmatpush.msra.mxu2 %v218_v29  ;;  %v230_v47 = vld [vmem:[%s1167_s1 + $0x1a0] sm:$0xff]  ;;  %v213_v49 = vld [vmem:[%s1167_s1 + $0x118] sm:$0xff]  ;;  %v180_v52 = vld [vmem:[%s1167_s1 + $0x10] sm:$0xff] }
  0x24   : > { %333 = vmatpush.msra.mxu1 %v202_v30  ;;  %314 = vmatpush.msra.mxu0 %v185_v32  ;;  %v197_v50 = vld [vmem:[%s1167_s1 + $0x98] sm:$0xff]  ;;  %v212_v53 = vld [vmem:[%s1167_s1 + $0x110] sm:$0xff]  ;;  %v179_v56 = vld [vmem:[%s1167_s1 + $0x8] sm:$0xff] }
  0x25   : > { %373 = vmatpush.msra.mxu3 %v234_v31  ;;  %354 = vmatpush.msra.mxu2 %v217_v33  ;;  %v229_v51 = vld [vmem:[%s1167_s1 + $0x198] sm:$0xff]  ;;  %v196_v54 = vld [vmem:[%s1167_s1 + $0x90] sm:$0xff]  ;;  %v211_v57 = vld [vmem:[%s1167_s1 + $0x108] sm:$0xff] }
  0x26   : > { %334 = vmatpush.msra.mxu1 %v201_v34  ;;  %315 = vmatpush.msra.mxu0 %v184_v36  ;;  %v228_v55 = vld [vmem:[%s1167_s1 + $0x190] sm:$0xff]  ;;  %v195_v58 = vld [vmem:[%s1167_s1 + $0x88] sm:$0xff]  ;;  %v178_v60 = vld [vmem:[%s1167_s1] sm:$0xff] }
  0x27   : > { %374 = vmatpush.msra.mxu3 %v233_v35  ;;  %355 = vmatpush.msra.mxu2 %v216_v37  ;;  %v227_v59 = vld [vmem:[%s1167_s1 + $0x188] sm:$0xff]  ;;  %v210_v61 = vld [vmem:[%s1167_s1 + $0x100] sm:$0xff]  ;;  %v257_v62 = vld [vmem:[%s1167_s1 + $0x278] sm:$0xff] }
  0x28   : > { %335 = vmatpush.msra.mxu1 %v200_v38  ;;  %316 = vmatpush.msra.mxu0 %v183_v40  ;;  %v289_v63 = vld [vmem:[%s1167_s1 + $0x378] sm:$0xff]  ;;  %v194_v0 = vld [vmem:[%s1167_s1 + $0x80] sm:$0xff]  ;;  %v256_v2 = vld [vmem:[%s1167_s1 + $0x270] sm:$0xff] }
  0x29   : > { %375 = vmatpush.msra.mxu3 %v232_v39  ;;  %356 = vmatpush.msra.mxu2 %v215_v41  ;;  %v226_v1 = vld [vmem:[%s1167_s1 + $0x180] sm:$0xff]  ;;  %v273_v3 = vld [vmem:[%s1167_s1 + $0x2f8] sm:$0xff]  ;;  %v288_v4 = vld [vmem:[%s1167_s1 + $0x370] sm:$0xff] }
  0x2a   : > { %336 = vmatpush.msra.mxu1 %v199_v42  ;;  %317 = vmatpush.msra.mxu0 %v182_v44  ;;  %v305_v5 = vld [vmem:[%s1167_s1 + $0x3f8] sm:$0xff]  ;;  %v255_v6 = vld [vmem:[%s1167_s1 + $0x268] sm:$0xff]  ;;  %v272_v7 = vld [vmem:[%s1167_s1 + $0x2f0] sm:$0xff] }
  0x2b   : > { %376 = vmatpush.msra.mxu3 %v231_v43  ;;  %357 = vmatpush.msra.mxu2 %v214_v45  ;;  %v287_v8 = vld [vmem:[%s1167_s1 + $0x368] sm:$0xff]  ;;  %v304_v9 = vld [vmem:[%s1167_s1 + $0x3f0] sm:$0xff]  ;;  %v254_v10 = vld [vmem:[%s1167_s1 + $0x260] sm:$0xff] }
  0x2c   : > { %337 = vmatpush.msra.mxu1 %v198_v46  ;;  %318 = vmatpush.msra.mxu0 %v181_v48  ;;  %v271_v11 = vld [vmem:[%s1167_s1 + $0x2e8] sm:$0xff]  ;;  %v286_v12 = vld [vmem:[%s1167_s1 + $0x360] sm:$0xff]  ;;  %v253_v14 = vld [vmem:[%s1167_s1 + $0x258] sm:$0xff] }
  0x2d   : > { %377 = vmatpush.msra.mxu3 %v230_v47  ;;  %358 = vmatpush.msra.mxu2 %v213_v49  ;;  %v303_v13 = vld [vmem:[%s1167_s1 + $0x3e8] sm:$0xff]  ;;  %v270_v15 = vld [vmem:[%s1167_s1 + $0x2e0] sm:$0xff]  ;;  %v285_v16 = vld [vmem:[%s1167_s1 + $0x358] sm:$0xff] }
  0x2e   : > { %338 = vmatpush.msra.mxu1 %v197_v50  ;;  %319 = vmatpush.msra.mxu0 %v180_v52  ;;  %v302_v17 = vld [vmem:[%s1167_s1 + $0x3e0] sm:$0xff]  ;;  %v252_v18 = vld [vmem:[%s1167_s1 + $0x250] sm:$0xff]  ;;  %v269_v19 = vld [vmem:[%s1167_s1 + $0x2d8] sm:$0xff] }
  0x2f   : > { %378 = vmatpush.msra.mxu3 %v229_v51  ;;  %359 = vmatpush.msra.mxu2 %v212_v53  ;;  %v284_v20 = vld [vmem:[%s1167_s1 + $0x350] sm:$0xff]  ;;  %v301_v21 = vld [vmem:[%s1167_s1 + $0x3d8] sm:$0xff]  ;;  %v251_v22 = vld [vmem:[%s1167_s1 + $0x248] sm:$0xff] }
  0x30   : > { %339 = vmatpush.msra.mxu1 %v196_v54  ;;  %320 = vmatpush.msra.mxu0 %v179_v56  ;;  %v268_v23 = vld [vmem:[%s1167_s1 + $0x2d0] sm:$0xff]  ;;  %v283_v24 = vld [vmem:[%s1167_s1 + $0x348] sm:$0xff]  ;;  %v250_v26 = vld [vmem:[%s1167_s1 + $0x240] sm:$0xff] }
  0x31   : > { %379 = vmatpush.msra.mxu3 %v228_v55  ;;  %360 = vmatpush.msra.mxu2 %v211_v57  ;;  %v300_v25 = vld [vmem:[%s1167_s1 + $0x3d0] sm:$0xff]  ;;  %v267_v27 = vld [vmem:[%s1167_s1 + $0x2c8] sm:$0xff]  ;;  %v282_v28 = vld [vmem:[%s1167_s1 + $0x340] sm:$0xff] }
  0x32   : > { %340 = vmatpush.msra.mxu1 %v195_v58  ;;  %321 = vmatpush.msra.mxu0 %v178_v60  ;;  %v299_v29 = vld [vmem:[%s1167_s1 + $0x3c8] sm:$0xff]  ;;  %v249_v30 = vld [vmem:[%s1167_s1 + $0x238] sm:$0xff]  ;;  %v266_v31 = vld [vmem:[%s1167_s1 + $0x2c0] sm:$0xff] }
  0x33   : > { %380 = vmatpush.msra.mxu3 %v227_v59  ;;  %361 = vmatpush.msra.mxu2 %v210_v61  ;;  %v281_v32 = vld [vmem:[%s1167_s1 + $0x338] sm:$0xff]  ;;  %v298_v33 = vld [vmem:[%s1167_s1 + $0x3c0] sm:$0xff]  ;;  %v248_v34 = vld [vmem:[%s1167_s1 + $0x230] sm:$0xff] }
  0x34   : > { %386 = vmatpush.msrb.mxu0 %v257_v62  ;;  %341 = vmatpush.msra.mxu1 %v194_v0  ;;  %v265_v35 = vld [vmem:[%s1167_s1 + $0x2b8] sm:$0xff]  ;;  %v280_v36 = vld [vmem:[%s1167_s1 + $0x330] sm:$0xff]  ;;  %v247_v38 = vld [vmem:[%s1167_s1 + $0x228] sm:$0xff] }
  0x35   : > { %426 = vmatpush.msrb.mxu2 %v289_v63  ;;  %381 = vmatpush.msra.mxu3 %v226_v1  ;;  %v297_v37 = vld [vmem:[%s1167_s1 + $0x3b8] sm:$0xff]  ;;  %v264_v39 = vld [vmem:[%s1167_s1 + $0x2b0] sm:$0xff]  ;;  %v279_v40 = vld [vmem:[%s1167_s1 + $0x328] sm:$0xff] }
  0x36   : > { %387 = vmatpush.msrb.mxu0 %v256_v2  ;;  %406 = vmatpush.msrb.mxu1 %v273_v3  ;;  %v296_v41 = vld [vmem:[%s1167_s1 + $0x3b0] sm:$0xff]  ;;  %v246_v43 = vld [vmem:[%s1167_s1 + $0x220] sm:$0xff]  ;;  %v263_v44 = vld [vmem:[%s1167_s1 + $0x2a8] sm:$0xff] }
  0x37   : > { %427 = vmatpush.msrb.mxu2 %v288_v4  ;;  %446 = vmatpush.msrb.mxu3 %v305_v5  ;;  %v172_v42 = vld [vmem:[%s1043_s7 + $0x10] sm:$0xff]  ;;  %v278_v45 = vld [vmem:[%s1167_s1 + $0x320] sm:$0xff]  ;;  %v295_v46 = vld [vmem:[%s1167_s1 + $0x3a8] sm:$0xff] }
  0x38   : > { %388 = vmatpush.msrb.mxu0 %v255_v6  ;;  %407 = vmatpush.msrb.mxu1 %v272_v7  ;;  %v170_v47 = vld [vmem:[%s1043_s7] sm:$0xff]  ;;  %v173_v48 = vld [vmem:[%s1043_s7 + $0x18] sm:$0xff]  ;;  %v171_v53 = vld [vmem:[%s1043_s7 + $0x8] sm:$0xff] }
  0x39   : > { %428 = vmatpush.msrb.mxu2 %v287_v8  ;;  %447 = vmatpush.msrb.mxu3 %v304_v9  ;;  %v245_v49 = vld [vmem:[%s1167_s1 + $0x218] sm:$0xff]  ;;  %v262_v50 = vld [vmem:[%s1167_s1 + $0x2a0] sm:$0xff]  ;;  %v244_v54 = vld [vmem:[%s1167_s1 + $0x210] sm:$0xff] }
  0x3a   : > { %389 = vmatpush.msrb.mxu0 %v254_v10  ;;  %408 = vmatpush.msrb.mxu1 %v271_v11  ;;  %v277_v51 = vld [vmem:[%s1167_s1 + $0x318] sm:$0xff]  ;;  %v294_v52 = vld [vmem:[%s1167_s1 + $0x3a0] sm:$0xff]  ;;  %v276_v56 = vld [vmem:[%s1167_s1 + $0x310] sm:$0xff] }
  0x3b   : > { %429 = vmatpush.msrb.mxu2 %v286_v12  ;;  %448 = vmatpush.msrb.mxu3 %v303_v13  ;;  %v261_v55 = vld [vmem:[%s1167_s1 + $0x298] sm:$0xff]  ;;  %v243_v58 = vld [vmem:[%s1167_s1 + $0x208] sm:$0xff]  ;;  %v260_v59 = vld [vmem:[%s1167_s1 + $0x290] sm:$0xff] }
  0x3c   : > { %390 = vmatpush.msrb.mxu0 %v253_v14  ;;  %409 = vmatpush.msrb.mxu1 %v270_v15  ;;  %v293_v57 = vld [vmem:[%s1167_s1 + $0x398] sm:$0xff]  ;;  %v275_v60 = vld [vmem:[%s1167_s1 + $0x308] sm:$0xff]  ;;  %v292_v61 = vld [vmem:[%s1167_s1 + $0x390] sm:$0xff] }
  0x3d   : > { %430 = vmatpush.msrb.mxu2 %v285_v16  ;;  %449 = vmatpush.msrb.mxu3 %v302_v17  ;;  %v242_v62 = vld [vmem:[%s1167_s1 + $0x200] sm:$0xff]  ;;  %v259_v63 = vld [vmem:[%s1167_s1 + $0x288] sm:$0xff]  ;;  %v176_v3 = vld [vmem:[%s1043_s7 + $0x30] sm:$0xff] }
  0x3e   : > { %391 = vmatpush.msrb.mxu0 %v252_v18  ;;  %410 = vmatpush.msrb.mxu1 %v269_v19  ;;  %v274_v0 = vld [vmem:[%s1167_s1 + $0x300] sm:$0xff]  ;;  %v291_v1 = vld [vmem:[%s1167_s1 + $0x388] sm:$0xff]  ;;  %v177_v7 = vld [vmem:[%s1043_s7 + $0x38] sm:$0xff] }
  0x3f   : > { %431 = vmatpush.msrb.mxu2 %v284_v20  ;;  %450 = vmatpush.msrb.mxu3 %v301_v21  ;;  %v174_v2 = vld [vmem:[%s1043_s7 + $0x20] sm:$0xff]  ;;  %v175_v6 = vld [vmem:[%s1043_s7 + $0x28] sm:$0xff]  ;;  %s552_s7 = sshll.u32 %s700_s16, 3  ;;  %s470_s16 = scalar_lea.sflag [#allocation3], %s161_s9 }
  0x40   : > { %392 = vmatpush.msrb.mxu0 %v251_v22  ;;  %411 = vmatpush.msrb.mxu1 %v268_v23  ;;  %v258_v4 = vld [vmem:[%s1167_s1 + $0x280] sm:$0xff]  ;;  %s480_s24 = scalar_lea.hbm %s1169_s3, %s552_s7 }
  0x41   : > { %432 = vmatpush.msrb.mxu2 %v283_v24  ;;  %451 = vmatpush.msrb.mxu3 %v300_v25  ;;  %v290_v5 = vld [vmem:[%s1167_s1 + $0x380] sm:$0xff]  ;;  %s484_s28 = sshll.u32 %s480_s24, 4  ;;  %s485_s28 = int_to_ptr.hbm [resolvable:$true] %s484_s28 }
  0x42   : > { %393 = vmatpush.msrb.mxu0 %v250_v26  ;;  %412 = vmatpush.msrb.mxu1 %v267_v27  ;;  %v169_v21 = vld [vmem:[%s1168_s2] sm:$0xff]  ;;  %s609_s11 = sshra.s32 %s485_s28, 4  ;;  %s610_s11 = int_to_ptr.hbm [resolvable:$true] %s609_s11 }
  0x43   : > { %433 = vmatpush.msrb.mxu2 %v282_v28  ;;  %452 = vmatpush.msrb.mxu3 %v299_v29  ;;  %s611_s29 = scalar_lea.hbm %s610_s11, 8  ;;  %p616_p0 = scmp.lt.s32.totalorder %s610_s11, %s1169_s3 }
  0x44   : > { %394 = vmatpush.msrb.mxu0 %v249_v30  ;;  %413 = vmatpush.msrb.mxu1 %v266_v31  ;;  %p612_p11 = scmp.ne.s32.totalorder %s610_s11, %s611_s29  ;;  %p617_p1 = scmp.lt.s32.totalorder %s615_s5, %s611_s29 }
  0x45   : > { %434 = vmatpush.msrb.mxu2 %v281_v32  ;;  %453 = vmatpush.msrb.mxu3 %v298_v33 }
  0x46   : > { %395 = vmatpush.msrb.mxu0 %v248_v34  ;;  %414 = vmatpush.msrb.mxu1 %v265_v35  ;;  %p613_p12 = pnand %p612_p11, %p717_p5  ;;  %p618_p2 = por %p617_p1, %p616_p0 }
  0x47   : > { %435 = vmatpush.msrb.mxu2 %v280_v36  ;;  %454 = vmatpush.msrb.mxu3 %v297_v37 }
  0x48   : > { %396 = vmatpush.msrb.mxu0 %v247_v38  ;;  %415 = vmatpush.msrb.mxu1 %v264_v39  ;;  %p614_p13 = pneg %p613_p12 }
  0x49   : > { %436 = vmatpush.msrb.mxu2 %v279_v40  ;;  %455 = vmatpush.msrb.mxu3 %v296_v41 }
  0x4a   : > { %362 = vmatmul.f32.vlgmr.msra.gmra.mxu2 %v172_v42  ;;  %397 = vmatpush.msrb.mxu0 %v246_v43  ;;  %p619_p3 = pnand %p618_p2, %p614_p13 }
  0x4b   : > { %416 = vmatpush.msrb.mxu1 %v263_v44  ;;  %437 = vmatpush.msrb.mxu2 %v278_v45 }
  0x4c   : > { %456 = vmatpush.msrb.mxu3 %v295_v46  ;;  %322 = vmatmul.f32.vlgmr.msra.gmra.mxu0 %v170_v47 }
  0x4d   : > { %382 = vmatmul.f32.vlgmr.msra.gmra.mxu3 %v173_v48  ;;  %398 = vmatpush.msrb.mxu0 %v245_v49 }
  0x4e   : > { %417 = vmatpush.msrb.mxu1 %v262_v50  ;;  %438 = vmatpush.msrb.mxu2 %v277_v51 }
  0x4f   : > { %457 = vmatpush.msrb.mxu3 %v294_v52  ;;  %342 = vmatmul.f32.vlgmr.msra.gmra.mxu1 %v171_v53 }
  0x50   : > { %399 = vmatpush.msrb.mxu0 %v244_v54  ;;  %418 = vmatpush.msrb.mxu1 %v261_v55 }
  0x51   : > { %439 = vmatpush.msrb.mxu2 %v276_v56  ;;  %458 = vmatpush.msrb.mxu3 %v293_v57 }
  0x52   : > { %400 = vmatpush.msrb.mxu0 %v243_v58  ;;  %419 = vmatpush.msrb.mxu1 %v260_v59 }
  0x53   : > { %440 = vmatpush.msrb.mxu2 %v275_v60  ;;  %459 = vmatpush.msrb.mxu3 %v292_v61 }
  0x54   : > { %401 = vmatpush.msrb.mxu0 %v242_v62  ;;  %420 = vmatpush.msrb.mxu1 %v259_v63 }
  0x55   : > { %441 = vmatpush.msrb.mxu2 %v274_v0  ;;  %460 = vmatpush.msrb.mxu3 %v291_v1 }
  0x56   : > { %402 = vmatmul.f32.vlgmr.msrb.gmra.mxu0 %v174_v2  ;;  %442 = vmatmul.f32.vlgmr.msrb.gmra.mxu2 %v176_v3 }
  0x57   : > { %421 = vmatpush.msrb.mxu1 %v258_v4  ;;  %461 = vmatpush.msrb.mxu3 %v290_v5 }
  0x58   : > { %422 = vmatmul.f32.vlgmr.msrb.gmra.mxu1 %v175_v6  ;;  %462 = vmatmul.f32.vlgmr.msrb.gmra.mxu3 %v177_v7 }
  0xc9   : > { %v323_v8 = vpop.f32.mrf.mxu0 }
  0xcc   : > { %v343_v9 = vpop.f32.mrf.mxu1 }
  0xcd   : > { %v344_v10 = vadd.f32 %v343_v9, %v323_v8  ;;  %v363_v11 = vpop.f32.mrf.mxu2 }
  0xcf   : > { %v364_v12 = vadd.f32 %v363_v11, %v344_v10 }
  0xd0   : > { %v383_v13 = vpop.f32.mrf.mxu3 }
  0xd1   : > { %v384_v14 = vadd.f32 %v383_v13, %v364_v12 }
  0xd3   : > { %v403_v15 = vpop.f32.mrf.mxu0 }
  0xd4   : > { %v404_v16 = vadd.f32 %v403_v15, %v384_v14 }
  0xd5   : > { %v423_v17 = vpop.f32.mrf.mxu1 }
  0xd6   : > { %v424_v18 = vadd.f32 %v423_v17, %v404_v16 }
  0xd9   : > { %v443_v19 = vpop.f32.mrf.mxu2 }
  0xda   : > { %v444_v20 = vadd.f32 %v443_v19, %v424_v18 }
  0xdb   : > { %v463_v22 = vpop.f32.mrf.mxu3 }
  0xdc   : > { %v464_v23 = vadd.f32 %v463_v22, %v444_v20 }
  0xde   : > { %v466_v24 = vadd.f32 %v464_v23, %v169_v21 }
  0xe0   : > { %468 = vst.msk [vmem:[%s163_s26] sm:$0xff] %vm467_vm0, %v466_v24 }
  0xe1   : > { %622 = shalt.err (!%p619_p3)
}
  0xe2   : > { %556 = dma.vmem_to_hbm [thread:$0]  (%p717_p5), %s483_s27, 128, %s485_s28, %s470_s16  }
  0xe3 PF: > { %p562_p4 = scmp.ge.s32.totalorder %s657_s15, 2  ;;  %s496_s9 = sand.u32 1, %s645_s12  }
  0xe4   : > { %s497_s17 = scalar_lea.sflag [#allocation3], %s496_s9 }
  0xe5   : > { %p559_p7 = pnand %p562_p4, %p721_p6 }
  0xe7   : > { %p560_p8 = pneg %p559_p7 }
  0xe9   : > { %640 = dma.done.wait (%p560_p8), %s497_s17, 128  }
  0xea   : > { %642 = vsyncadd (%p560_p8), %s497_s17, 4294967168  ;;  %p13_p9 = scmp.ge.s32.totalorder %s704_s18, 4   ;;  %s1172_s12 = smov %s649_s13 }
  0xeb   : > { %s1173_s13 = smov %s653_s14  ;;  %s1174_s14 = smov %s715_s21 }
  0xec   : > { %s1175_s15 = smov %s704_s18  ;;  %15 = sbr.rel (!%p13_p9) target bundleno = 3 (0x3), region = 67 }
  0xf1   :  { %503 = vsyncpa [#allocation3], 1 }
  0xf2   :  { %505 = vsyncpa [#allocation3 + $0x1], 1 }

</bundles_post_ra>
